<compile_context>
chip_gen: v6e
topology: v6e:2x2x1
jax: 0.10.0
libtpu: 0.0.40
codegen_flags: <defaults>
</compile_context>

<pallas_src>
import functools

import jax
import jax.numpy as jnp
from jax.experimental import pallas as pl
from jax.experimental.pallas import tpu as pltpu


def _masked_softmax_kernel(x_ref, m_ref, o_ref):
    """One block = (tile_rows, cols); softmax along the last (lane) axis."""
    x = x_ref[...].astype(jnp.float32)
    masked = jnp.where(m_ref[...] != 0, -jnp.inf, x)
    row_max = jnp.max(masked, axis=-1, keepdims=True)
    # exp(-inf - finite_max) == 0, so masked positions contribute nothing.
    # (A fully masked row gives NaN, same as torch._masked_softmax.)
    e = jnp.exp(masked - row_max)
    denom = jnp.sum(e, axis=-1, keepdims=True)
    # EUP reciprocal (vrcp) -> off the VPU path; kernel is memory-bound anyway.
    o_ref[...] = (e * pl.reciprocal(denom, approx=True)).astype(o_ref.dtype)


def _round_up(x, m):
    return ((x + m - 1) // m) * m


def _vmem_limit_bytes():
    """~3/4 of physical VMEM, clamped to [40 MiB, 96 MiB]."""
    cap = 64 * 1024 * 1024  # conservative default: v7x per-TensorCore VMEM
    try:
        cap = int(pltpu.get_tpu_info().vmem_capacity_bytes)
    except Exception:
        pass
    return max(40 * 1024 * 1024, min((cap * 3) // 4, 96 * 1024 * 1024))


def _choose_tile_rows(rows, cols, x_itemsize, mask_itemsize, vmem_limit):
    """Pick a row tile: big DMAs, multiple of 32 (int8 mask packing), grid>=2."""
    if rows <= 32:
        # Tiny problem: one full-extent block (block dim == array dim is
        # always a legal TPU tiling).
        return rows
    # Per tile-row VMEM cost: double-buffered x / out / mask pipeline streams
    # plus ~3 fp32 temporaries (masked, e, result) live while computing.
    per_row = cols * (2 * (2 * x_itemsize + mask_itemsize) + 3 * 4)
    budget = min(24 * 1024 * 1024, vmem_limit // 3)
    tile = max(32, (budget // per_row) // 32 * 32)
    tile = min(tile, 8192)
    # Keep the grid at >= 2 steps so the pipeline has something to overlap and
    # v7x can shard rows across its two TensorCores.
    half = _round_up(pl.cdiv(rows, 2), 32)
    return min(tile, half)


def _masked_softmax_2d(x2d, m2d):
    rows, cols = x2d.shape
    vmem_limit = _vmem_limit_bytes()
    tile_rows = _choose_tile_rows(
        rows, cols, x2d.dtype.itemsize, m2d.dtype.itemsize, vmem_limit
    )
    grid = (pl.cdiv(rows, tile_rows),)  # partial last block handled by Pallas

    # TODO(synk): for cols too large for the VMEM budget (attention-scale
    # rows), add a col-tiled online-softmax path: grid=(row_tiles, col_tiles)
    # with the col axis "arbitrary", running max/sum in VMEM scratch and a
    # pl.when finalize on the last col step.
    # TODO(synk): for cols < 128 that divide 128, pack 128//cols logical rows
    # per physical row for lane-dense loads/stores (only enable once the
    # in-kernel reshape is verified to stay in-register via lower_as_mlir).

    return pl.pallas_call(
        _masked_softmax_kernel,
        out_shape=jax.ShapeDtypeStruct((rows, cols), x2d.dtype),
        grid_spec=pltpu.PrefetchScalarGridSpec(
            num_scalar_prefetch=0,
            grid=grid,
            in_specs=[
                pl.BlockSpec((tile_rows, cols), lambda i: (i, 0)),
                pl.BlockSpec((tile_rows, cols), lambda i: (i, 0)),
            ],
            out_specs=pl.BlockSpec((tile_rows, cols), lambda i: (i, 0)),
        ),
        compiler_params=pltpu.CompilerParams(
            dimension_semantics=("parallel",),
            vmem_limit_bytes=vmem_limit,
        ),
    )(x2d, m2d)


def masked_softmax(x, mask, dim=None):
    """JAX/Pallas equivalent of trident's MaskedSoftmax.forward.

    x:    float array, any rank.
    mask: bool / integer / float array, same shape as x; NONZERO entries are
          masked out (filled with -inf before the softmax).
    dim:  axis along which softmax is computed (defaults to the last axis).
    """
    if dim is None:
        dim = x.ndim - 1  # torch's dim=None is deprecated; default to last axis
    dim = dim % x.ndim

    # Keep the mask narrow: bool -> int8 (1 byte); never widen to int32.
    # Wider masks are passed through untouched and compared against 0
    # in-kernel on their native dtype (avoids an extra HBM cast pass).
    if mask.dtype == jnp.bool_:
        mask = mask.astype(jnp.int8)

    # TODO(synk): when dim is not the last axis, express the layout via
    # BlockSpec/index_map (or in-kernel einshape) instead of an HBM transpose
    # of both operands; the transpose roughly doubles traffic for this
    # memory-bound op.
    if dim != x.ndim - 1:
        x = jnp.moveaxis(x, dim, -1)
        mask = jnp.moveaxis(mask, dim, -1)

    lead_shape = x.shape[:-1]
    cols = x.shape[-1]
    rows = int(functools.reduce(lambda a, b: a * b, lead_shape, 1))

    out2d = _masked_softmax_2d(x.reshape(rows, cols), mask.reshape(rows, cols))

    out = out2d.reshape(*lead_shape, cols)
    if dim != out.ndim - 1:
        out = jnp.moveaxis(out, -1, dim)
    return out


class MaskedSoftmax:
    """Mirror of the PyTorch module (stateless; no parameters)."""

    def __init__(self, dim=None):
        self.dim = dim

    def __call__(self, x, mask):
        return masked_softmax(x, mask, self.dim)


if __name__ == "__main__":
    key = jax.random.PRNGKey(0)
    k1, k2 = jax.random.split(key)

    # Small NCHW-like input, softmax over the last axis.
    B, C, H, W = 2, 4, 16, 16
    x = jax.random.normal(k1, (B, C, H, W), dtype=jnp.float32)
    # Boolean mask; True => masked out (filled with -inf before softmax).
    mask = jax.random.bernoulli(k2, p=0.3, shape=(B, C, H, W))

    module = MaskedSoftmax(dim=-1)
    out = jax.block_until_ready(module(x, mask))

    # Reference check (plain JAX).  Tolerance covers the approximate (EUP)
    # reciprocal used for the softmax denominator.
    ref = jax.nn.softmax(jnp.where(mask, -jnp.inf, x), axis=-1)
    assert out.shape == x.shape
    assert out.dtype == x.dtype
    assert jnp.allclose(out, ref, atol=2e-3, rtol=2e-3, equal_nan=True)

    print("KERNEL_OK")
</pallas_src>

<mosaic_0001>
module attributes {stable_mosaic.version = 11 : i64} {
  func.func @_masked_softmax_kernel(%arg0: i32, %arg1: memref<64x16xf32, #tpu.memory_space<vmem>>, %arg2: memref<64x16xi8, #tpu.memory_space<vmem>>, %arg3: memref<64x16xf32, #tpu.memory_space<vmem>>) attributes {dimension_semantics = [#tpu.dimension_semantics<parallel>], iteration_bounds = array<i64: 2>, scalar_prefetch = 0 : i64, scratch_operands = 0 : i64, tpu.core_type = #tpu.core_type<tc>, window_params = [{transform_indices = @transform_0, window_bounds = array<i64: 64, 16>}, {transform_indices = @transform_1, window_bounds = array<i64: 64, 16>}, {transform_indices = @transform_2, window_bounds = array<i64: 64, 16>}]} {
    %c0 = arith.constant 0 : index
    %c0_0 = arith.constant 0 : index
    %0 = vector.load %arg1[%c0, %c0_0] : memref<64x16xf32, #tpu.memory_space<vmem>>, vector<64x16xf32>
    %c0_1 = arith.constant 0 : index
    %c0_2 = arith.constant 0 : index
    %1 = vector.load %arg2[%c0_1, %c0_2] : memref<64x16xi8, #tpu.memory_space<vmem>>, vector<64x16xi8>
    %c0_i8 = arith.constant 0 : i8
    %2 = vector.broadcast %c0_i8 : i8 to vector<64x16xi8>
    %3 = arith.cmpi ne, %1, %2 : vector<64x16xi8>
    %cst = arith.constant 0xFF800000 : f32
    %4 = vector.broadcast %cst : f32 to vector<64x16xf32>
    %5 = arith.select %3, %4, %0 : vector<64x16xi1>, vector<64x16xf32>
    %cst_3 = arith.constant dense<0xFF800000> : vector<64xf32>
    %6 = vector.multi_reduction <maximumf>, %5, %cst_3 [1] : vector<64x16xf32> to vector<64xf32>
    %7 = vector.shape_cast %6 : vector<64xf32> to vector<64x1xf32>
    %8 = vector.broadcast %7 : vector<64x1xf32> to vector<64x16xf32>
    %9 = arith.subf %5, %8 : vector<64x16xf32>
    %10 = math.exp %9 : vector<64x16xf32>
    %cst_4 = arith.constant dense<0.000000e+00> : vector<64xf32>
    %11 = vector.multi_reduction <add>, %10, %cst_4 [1] : vector<64x16xf32> to vector<64xf32>
    %12 = vector.shape_cast %11 : vector<64xf32> to vector<64x1xf32>
    %13 = tpu.reciprocal %12 {approx = true} : vector<64x1xf32> -> vector<64x1xf32>
    %14 = vector.broadcast %13 : vector<64x1xf32> to vector<64x16xf32>
    %15 = arith.mulf %10, %14 : vector<64x16xf32>
    %c0_5 = arith.constant 0 : index
    %c0_6 = arith.constant 0 : index
    %16 = vector.load %arg3[%c0_5, %c0_6] : memref<64x16xf32, #tpu.memory_space<vmem>>, vector<64x16xf32>
    tpu.vector_store %arg3[%c0_5, %c0_6], %15 {strides = array<i32>} : memref<64x16xf32, #tpu.memory_space<vmem>>, vector<64x16xf32>,
    return
  }
  func.func @transform_0(%arg0: i32) -> (i32, i32) {
    %c0_i32 = arith.constant 0 : i32
    %c0_i32_0 = arith.constant 0 : i32
    return %arg0, %c0_i32 : i32, i32
  }
  func.func @transform_1(%arg0: i32) -> (i32, i32) {
    %c0_i32 = arith.constant 0 : i32
    %c0_i32_0 = arith.constant 0 : i32
    return %arg0, %c0_i32 : i32, i32
  }
  func.func @transform_2(%arg0: i32) -> (i32, i32) {
    %c0_i32 = arith.constant 0 : i32
    %c0_i32_0 = arith.constant 0 : i32
    return %arg0, %c0_i32 : i32, i32
  }
}

</mosaic_0001>

<bundles_post_ra>
// kernel: tpu_custom_call.1
= control target key start
LH: loop header
LB: loop body
LE: loop exit
PB: predicated region body
PF: predicated region fallthrough
CT: control target
= control target key end

     0   :  { %s492_s9 = smov 0   ;;  %s563_s0 = inlined_call_operand.vmem [shape: f32[128,16], index: 0, kind: input, shape index: {}]   ;;  %s564_s1 = inlined_call_operand.vmem [shape: s8[128,16], index: 1, kind: input, shape index: {}]   ;;  %s565_s2 = inlined_call_operand.vmem [shape: f32[128,16], index: 2, kind: output, shape index: {}]  }
   0x1 LB: > { %s414_s10 = sadd.s32 4294967295, %s474_s9   ;;  %p418_p0 = scmp.ge.s32.totalorder %s474_s9, 1  ;;  %s474_s9 = sphi %s492_s9, %s12_s9  }
   0x2   : > { %p124_p1 = scmp.lt.s32.totalorder %s474_s9, 3 }
   0x4   : > { %p125_p2 = pnand %p418_p0, %p124_p1 }
   0x5   : > { %s421_s11 = sshll.u32 (!%p125_p2), %s414_s10, 1  ;;  %s419_s12 = sshll.u32 (!%p125_p2), %s414_s10, 3 }
   0x6   : > { %128 = sbr.rel (%p125_p2) target bundleno = 358 (0x166), region = 28  ;;  %p158_p3 = scmp.lt.s32.totalorder (!%p125_p2), %s421_s11, 3 }
   0x7   : > { %p152_p4 = scmp.lt.s32.totalorder (!%p125_p2), %s419_s12, 15 }
   0xb   : > { %s567_s11 = smov (!%p158_p3, %s421_s11), 3  ;;  %s569_s12 = smov (!%p152_p4, %s419_s12), 15  ;;  %v476_v2 = vmov 0   ;;  %vm249_vm2 = vcmask 130048  }
   0xc   : > { %s422_s13 = sshll.u32 %s567_s11, 3  ;;  %s420_s17 = sshll.u32 %s569_s12, 3 }
   0xd   : > { %s161_s16 = scalar_lea.vmem %s564_s1, %s422_s13  ;;  %s513_s20 = scalar_lea.vmem %s563_s0, %s420_s17 }
   0xe   : > { %v179_v0 = vld [vmem:[%s161_s16] sm:$0xff]  ;;  %v180_v1 = vld [vmem:[%s161_s16 + $0x8] sm:$0xff]  ;;  %v173_v31 = vld [vmem:[%s513_s20 + $0x10] sm:$0xff]  ;;  %s167_s23 = scalar_lea.vmem %s565_s2, %s420_s17 }
   0xf   : > { %vm181_vm0 = vnez %v179_v0  ;;  %vm182_vm1 = vnez %v180_v1  ;;  %v171_v29 = vld [vmem:[%s513_s20] sm:$0xff]  ;;  %v172_v33 = vld [vmem:[%s513_s20 + $0x8] sm:$0xff]  ;;  %v174_v36 = vld [vmem:[%s513_s20 + $0x18] sm:$0xff] }
  0x10   : > { %v183_v3 = vsel %vm181_vm0, 16843009, %v476_v2  ;;  %v184_v8 = vsel %vm182_vm1, 16843009, %v476_v2  ;;  %v175_v48 = vld [vmem:[%s513_s20 + $0x20] sm:$0xff]  ;;  %v176_v54 = vld [vmem:[%s513_s20 + $0x28] sm:$0xff] }
  0x11   : > { %v185_v4 = vunpack.c.0.s8 %v183_v3  ;;  %v187_v5 = vunpack.c.2.s8 %v183_v3  ;;  %v186_v6 = vunpack.c.1.s8 %v183_v3  ;;  %v188_v7 = vunpack.c.3.s8 %v183_v3  ;;  %v177_v58 = vld [vmem:[%s513_s20 + $0x30] sm:$0xff]  ;;  %v178_v62 = vld [vmem:[%s513_s20 + $0x38] sm:$0xff] }
  0x12   : > { %v189_v13 = vunpack.c.0.s8 %v184_v8  ;;  %v190_v14 = vunpack.c.1.s8 %v184_v8  ;;  %v191_v15 = vunpack.c.2.s8 %v184_v8  ;;  %v192_v16 = vunpack.c.3.s8 %v184_v8 }
  0x13   : > { %v193_v9 = vpack.c.b16 %v185_v4, %v185_v4  ;;  %v197_v10 = vpack.c.b16 %v187_v5, %v187_v5  ;;  %v195_v11 = vpack.c.b16 %v186_v6, %v186_v6  ;;  %v199_v12 = vpack.c.b16 %v188_v7, %v188_v7 }
  0x14   : > { %v201_v21 = vpack.c.b16 %v189_v13, %v189_v13  ;;  %v203_v22 = vpack.c.b16 %v190_v14, %v190_v14  ;;  %v205_v23 = vpack.c.b16 %v191_v15, %v191_v15  ;;  %v207_v24 = vpack.c.b16 %v192_v16, %v192_v16 }
  0x15   : > { %v194_v17 = vpack.c.b8 %v193_v9, %v193_v9  ;;  %v198_v18 = vpack.c.b8 %v197_v10, %v197_v10  ;;  %v196_v19 = vpack.c.b8 %v195_v11, %v195_v11  ;;  %v200_v20 = vpack.c.b8 %v199_v12, %v199_v12 }
  0x16   : > { %v202_v28 = vpack.c.b8 %v201_v21, %v201_v21  ;;  %v204_v38 = vpack.c.b8 %v203_v22, %v203_v22  ;;  %v206_v39 = vpack.c.b8 %v205_v23, %v205_v23  ;;  %v208_v53 = vpack.c.b8 %v207_v24, %v207_v24 }
  0x17   : > { %vm209_vm3 = vnez %v194_v17  ;;  %vm211_vm4 = vnez %v198_v18  ;;  %vm210_vm5 = vnez %v196_v19  ;;  %vm212_vm6 = vnez %v200_v20 }
  0x18   : > { %v217_v25 = vsel %vm209_vm3, 16843009, %v476_v2  ;;  %v219_v26 = vsel %vm211_vm4, 16843009, %v476_v2  ;;  %v218_v27 = vsel %vm210_vm5, 16843009, %v476_v2  ;;  %vm213_vm7 = vnez %v202_v28 }
  0x19   : > { %v225_v30 = vunpack.c.0.s8 %v217_v25  ;;  %v227_v32 = vunpack.c.0.s8 %v219_v26  ;;  %v226_v34 = vunpack.c.0.s8 %v218_v27  ;;  %v220_v35 = vsel %vm212_vm6, 16843009, %v476_v2 }
  0x1a   : > { %v228_v37 = vunpack.c.0.s8 %v220_v35  ;;  %v221_v40 = vsel %vm213_vm7, 16843009, %v476_v2  ;;  %vm214_vm12 = vnez %v204_v38  ;;  %vm215_vm13 = vnez %v206_v39 }
  0x1b   : > { %vm233_vm8 = vcmp.ne.s32.totalorder %v225_v30, 0  ;;  %vm235_vm9 = vcmp.ne.s32.totalorder %v227_v32, 0  ;;  %vm234_vm10 = vcmp.ne.s32.totalorder %v226_v34, 0  ;;  %v229_v49 = vunpack.c.0.s8 %v221_v40 }
  0x1c   : > { %v241_v41 = vsel %vm233_vm8, -inf, %v171_v29  ;;  %v243_v42 = vsel %vm235_vm9, -inf, %v173_v31  ;;  %v242_v43 = vsel %vm234_vm10, -inf, %v172_v33  ;;  %vm236_vm11 = vcmp.ne.s32.totalorder %v228_v37, 0 }
  0x1d   : > { %v250_v44 = vsel %vm249_vm2, %v241_v41, -inf  ;;  %v256_v45 = vsel %vm249_vm2, %v243_v42, -inf  ;;  %v244_v46 = vsel %vm236_vm11, -inf, %v174_v36  ;;  %v253_v47 = vsel %vm249_vm2, %v242_v43, -inf }
  0x1e   : > { %251 = vmax.xlane.f32.xlu0 %v250_v44  ;;  %257 = vmax.xlane.f32.xlu1 %v256_v45  ;;  %v259_v50 = vsel %vm249_vm2, %v244_v46, -inf  ;;  %v222_v51 = vsel %vm214_vm12, 16843009, %v476_v2  ;;  %v223_v52 = vsel %vm215_vm13, 16843009, %v476_v2  ;;  %vm237_vm14 = vcmp.ne.s32.totalorder %v229_v49, 0 }
  0x1f   : > { %v230_v55 = vunpack.c.0.s8 %v222_v51  ;;  %v231_v56 = vunpack.c.0.s8 %v223_v52  ;;  %v245_v57 = vsel %vm237_vm14, -inf, %v175_v48  ;;  %vm216_vm15 = vnez %v208_v53 }
  0x20   : > { %v224_v59 = vsel %vm216_vm15, 16843009, %v476_v2  ;;  %v262_v60 = vsel %vm249_vm2, %v245_v57, -inf }
  0x21   : > { %vm238_vm0 = vcmp.ne.s32.totalorder %v230_v55, 0  ;;  %vm239_vm1 = vcmp.ne.s32.totalorder %v231_v56, 0  ;;  %v232_v63 = vunpack.c.0.s8 %v224_v59 }
  0x22   : > { %254 = vmax.xlane.f32.xlu0 %v253_v47  ;;  %260 = vmax.xlane.f32.xlu1 %v259_v50  ;;  %v246_v61 = vsel %vm238_vm0, -inf, %v176_v54  ;;  %v247_v1 = vsel %vm239_vm1, -inf, %v177_v58 }
  0x23   : > { %v265_v0 = vsel %vm249_vm2, %v246_v61, -inf  ;;  %vm240_vm3 = vcmp.ne.s32.totalorder %v232_v63, 0  ;;  %v268_v4 = vsel %vm249_vm2, %v247_v1, -inf }
  0x24   : > { %v248_v3 = vsel %vm240_vm3, -inf, %v178_v62 }
  0x25   : > { %v271_v5 = vsel %vm249_vm2, %v248_v3, -inf }
  0x26   : > { %263 = vmax.xlane.f32.xlu0 %v262_v60  ;;  %266 = vmax.xlane.f32.xlu1 %v265_v0 }
  0x2a   : > { %269 = vmax.xlane.f32.xlu0 %v268_v4  ;;  %272 = vmax.xlane.f32.xlu1 %v271_v5 }
  0xa7   : > { %v252_v6 = vpop.xlane.xlu0 %251  ;;  %v258_v2 = vpop.xlane.xlu1 %257 }
  0xa8   : > { %v274_v7 = vsub.f32 %v241_v41, %v252_v6  ;;  %v276_v8 = vsub.f32 %v243_v42, %v258_v2 }
  0xaa   : > { %v282_v9 = vmul.f32 1.442695, %v274_v7  ;;  %v286_v10 = vmul.f32 1.442695, %v276_v8 }
  0xab   : > { %v255_v11 = vpop.xlane.xlu0 %254  ;;  %v261_v12 = vpop.xlane.xlu1 %260 }
  0xac   : > { %436 = vpow2.f32 %v282_v9  ;;  %v275_v13 = vsub.f32 %v242_v43, %v255_v11  ;;  %v277_v14 = vsub.f32 %v244_v46, %v261_v12 }
  0xad   : > { %438 = vpow2.f32 %v286_v10 }
  0xae   : > { %v284_v15 = vmul.f32 1.442695, %v275_v13  ;;  %v288_v16 = vmul.f32 1.442695, %v277_v14 }
  0xaf   : > { %v264_v17 = vpop.xlane.xlu0 %263  ;;  %v267_v18 = vpop.xlane.xlu1 %266 }
  0xb0   : > { %440 = vpow2.f32 %v284_v15  ;;  %v278_v19 = vsub.f32 %v245_v57, %v264_v17  ;;  %v279_v20 = vsub.f32 %v246_v61, %v267_v18 }
  0xb1   : > { %442 = vpow2.f32 %v288_v16 }
  0xb2   : > { %v290_v21 = vmul.f32 1.442695, %v278_v19  ;;  %v292_v22 = vmul.f32 1.442695, %v279_v20 }
  0xb3   : > { %v270_v23 = vpop.xlane.xlu0 %269  ;;  %v273_v24 = vpop.xlane.xlu1 %272 }
  0xb4   : > { %444 = vpow2.f32 %v290_v21  ;;  %v280_v25 = vsub.f32 %v247_v1, %v270_v23  ;;  %v281_v26 = vsub.f32 %v248_v3, %v273_v24 }
  0xb5   : > { %446 = vpow2.f32 %v292_v22 }
  0xb6   : > { %v294_v27 = vmul.f32 1.442695, %v280_v25  ;;  %v296_v28 = vmul.f32 1.442695, %v281_v26 }
  0xb8   : > { %448 = vpow2.f32 %v294_v27 }
  0xb9   : > { %v437_v29 = vpop.eup %436  ;;  %450 = vpow2.f32 %v296_v28 }
  0xba   : > { %v439_v30 = vpop.eup %438  ;;  %v298_v31 = vsel %vm249_vm2, %v437_v29, 0.0 }
  0xbb   : > { %299 = vadd.xlane.f32.xlu0 %v298_v31  ;;  %v304_v32 = vsel %vm249_vm2, %v439_v30, 0.0 }
  0xbd   : > { %v441_v33 = vpop.eup %440 }
  0xbe   : > { %v443_v34 = vpop.eup %442  ;;  %v301_v35 = vsel %vm249_vm2, %v441_v33, 0.0 }
  0xbf   : > { %305 = vadd.xlane.f32.xlu0 %v304_v32  ;;  %302 = vadd.xlane.f32.xlu1 %v301_v35  ;;  %v307_v36 = vsel %vm249_vm2, %v443_v34, 0.0 }
  0xc1   : > { %v445_v37 = vpop.eup %444 }
  0xc2   : > { %v447_v38 = vpop.eup %446  ;;  %v310_v39 = vsel %vm249_vm2, %v445_v37, 0.0 }
  0xc3   : > { %308 = vadd.xlane.f32.xlu1 %v307_v36  ;;  %311 = vadd.xlane.f32.xlu0 %v310_v39  ;;  %v313_v40 = vsel %vm249_vm2, %v447_v38, 0.0 }
  0xc5   : > { %v449_v41 = vpop.eup %448 }
  0xc6   : > { %v451_v42 = vpop.eup %450  ;;  %v316_v43 = vsel %vm249_vm2, %v449_v41, 0.0 }
  0xc7   : > { %314 = vadd.xlane.f32.xlu1 %v313_v40  ;;  %317 = vadd.xlane.f32.xlu0 %v316_v43  ;;  %v319_v44 = vsel %vm249_vm2, %v451_v42, 0.0 }
  0xcb   : > { %320 = vadd.xlane.f32.xlu1 %v319_v44 }
 0x144   : > { %v300_v45 = vpop.xlane.xlu0 %299 }
 0x145   : > { %452 = vrcp.f32 %v300_v45 }
 0x148   : > { %v303_v46 = vpop.xlane.xlu1 %302  ;;  %v306_v47 = vpop.xlane.xlu0 %305 }
 0x149   : > { %454 = vrcp.f32 %v303_v46 }
 0x14a   : > { %456 = vrcp.f32 %v306_v47 }
 0x14c   : > { %v309_v48 = vpop.xlane.xlu1 %308  ;;  %v312_v49 = vpop.xlane.xlu0 %311 }
 0x14d   : > { %458 = vrcp.f32 %v309_v48 }
 0x14e   : > { %460 = vrcp.f32 %v312_v49 }
 0x150   : > { %v315_v50 = vpop.xlane.xlu1 %314  ;;  %v318_v51 = vpop.xlane.xlu0 %317 }
 0x151   : > { %462 = vrcp.f32 %v315_v50 }
 0x152   : > { %v453_v52 = vpop.eup %452  ;;  %464 = vrcp.f32 %v318_v51 }
 0x153   : > { %v330_v53 = vmul.f32 %v453_v52, %v437_v29 }
 0x154   : > { %v321_v54 = vpop.xlane.xlu1 %320 }
 0x155   : > { %338 = vst.msk [vmem:[%s167_s23] sm:$0xff] %vm249_vm2, %v330_v53  ;;  %466 = vrcp.f32 %v321_v54 }
 0x156   : > { %v455_v55 = vpop.eup %454 }
 0x157   : > { %v457_v56 = vpop.eup %456  ;;  %v331_v57 = vmul.f32 %v455_v55, %v441_v33 }
 0x158   : > { %v332_v58 = vmul.f32 %v457_v56, %v439_v30 }
 0x159   : > { %339 = vst.msk [vmem:[%s167_s23 + $0x8] sm:$0xff] %vm249_vm2, %v331_v57 }
 0x15a   : > { %v459_v59 = vpop.eup %458  ;;  %340 = vst.msk [vmem:[%s167_s23 + $0x10] sm:$0xff] %vm249_vm2, %v332_v58 }
 0x15b   : > { %v461_v60 = vpop.eup %460  ;;  %v333_v61 = vmul.f32 %v459_v59, %v443_v34 }
 0x15c   : > { %v334_v62 = vmul.f32 %v461_v60, %v445_v37 }
 0x15d   : > { %341 = vst.msk [vmem:[%s167_s23 + $0x18] sm:$0xff] %vm249_vm2, %v333_v61 }
 0x15e   : > { %v463_v63 = vpop.eup %462  ;;  %342 = vst.msk [vmem:[%s167_s23 + $0x20] sm:$0xff] %vm249_vm2, %v334_v62 }
 0x15f   : > { %v465_v0 = vpop.eup %464  ;;  %v335_v1 = vmul.f32 %v463_v63, %v447_v38 }
 0x160   : > { %v336_v3 = vmul.f32 %v465_v0, %v449_v41 }
 0x161   : > { %343 = vst.msk [vmem:[%s167_s23 + $0x28] sm:$0xff] %vm249_vm2, %v335_v1 }
 0x162   : > { %v467_v4 = vpop.eup %466  ;;  %344 = vst.msk [vmem:[%s167_s23 + $0x30] sm:$0xff] %vm249_vm2, %v336_v3 }
 0x163   : > { %v337_v5 = vmul.f32 %v467_v4, %v451_v42 }
 0x165   : > { %345 = vst.msk [vmem:[%s167_s23 + $0x38] sm:$0xff] %vm249_vm2, %v337_v5 }
 0x166 PF: > { %s12_s9 = sadd.s32 1, %s474_s9  }
 0x167   : > { %p9_p5 = scmp.ge.s32.totalorder %s12_s9, 4  }
 0x169   :  { %11 = sbr.rel (!%p9_p5) target bundleno = 1 (0x1), region = 61 }

</bundles_post_ra>
